<compile_context>
chip_gen: v6e
topology: v6e:2x2x1
jax: 0.10.0
libtpu: 0.0.40
codegen_flags: <defaults>
</compile_context>

<pallas_src>
import jax
import jax.numpy as jnp
from jax.experimental import pallas as pl
from jax.experimental.pallas import tpu as pltpu

_LANES = 128            # lane-dense last dim
_TILE_ROWS = 4096       # (4096, 128) f32 tile = 2 MiB per operand block.
                        # Worst case streams: x(f32) + y(f32) + out(f32),
                        # double-buffered: (2+2+2) MiB * 2 = 12 MiB VMEM,
                        # under the 16 MiB v5e scoped default and well under
                        # v6e/v7x; we still raise vmem_limit_bytes for margin.
_MIN_TILE_ROWS = 512    # don't shrink blocks below 256 KiB hunting for an
                        # exact divisor; padding is cheaper past that point.
_SMALL_ELEMS = 1 << 20  # below ~4 MiB of f32, XLA's fused convert+add already
                        # runs at roofline and beats the pallas_call launch.
_VMEM_LIMIT = 32 << 20  # explicit scoped-VMEM budget; safe on all generations.


def _add_cast_kernel(x_ref, y_ref, o_ref):
    # The non-redundant _to_copy: cast y (and x, if narrow) to f32 inside the
    # kernel so the HBM reads stay at the source dtype width, then add.
    o_ref[...] = x_ref[...].astype(jnp.float32) + y_ref[...].astype(jnp.float32)


def _pick_tile_rows(rows: int, cap: int = _TILE_ROWS) -> int:
    """Largest row-tile <= cap that minimizes padded (wasted) rows.

    Full-array blocks are always legal; otherwise scan multiples of 8 from
    `cap` down to `_MIN_TILE_ROWS`, preferring exact divisors of `rows` (zero
    padding), and among equal padding preferring the largest tile.
    """
    if rows <= cap:
        return rows
    best_t = cap
    best_padded = pl.cdiv(rows, cap) * cap
    for t in range(cap, _MIN_TILE_ROWS - 1, -8):
        padded = pl.cdiv(rows, t) * t
        if padded < best_padded:
            best_t, best_padded = t, padded
        if padded == rows:          # exact divisor -> largest one wins, stop.
            break
    return best_t


def non_redundant_to_copy_net(x, y, *, min_pallas_elems: int = _SMALL_ELEMS):
    """x: float NCHW, y: any float dtype NCHW -> f32 NCHW (x + y.astype(f32))."""
    assert x.shape == y.shape, "x and y must have the same shape"
    total = x.size

    # Small or lane-ragged inputs: plain XLA fused elementwise is strictly
    # faster (no custom-call launch, no padding traffic).
    if total < min_pallas_elems or total % _LANES != 0:
        return x + y.astype(jnp.float32)

    rows = total // _LANES
    x2 = x.reshape(rows, _LANES)
    y2 = y.reshape(rows, _LANES)

    tile_r = _pick_tile_rows(rows)
    grid = (pl.cdiv(rows, tile_r),)

    # Advisory cost hint so XLA can schedule/overlap the custom call.
    bytes_accessed = (
        x.dtype.itemsize * total      # read x
        + y.dtype.itemsize * total    # read y (narrow dtype stays narrow)
        + 4 * total                   # write f32 out
    )
    cost = pl.CostEstimate(flops=total, transcendentals=0,
                           bytes_accessed=bytes_accessed)

    out2 = pl.pallas_call(
        _add_cast_kernel,
        out_shape=jax.ShapeDtypeStruct((rows, _LANES), jnp.float32),
        grid=grid,
        in_specs=[
            pl.BlockSpec((tile_r, _LANES), lambda i: (i, 0)),
            pl.BlockSpec((tile_r, _LANES), lambda i: (i, 0)),
        ],
        out_specs=pl.BlockSpec((tile_r, _LANES), lambda i: (i, 0)),
        compiler_params=pltpu.CompilerParams(
            dimension_semantics=("parallel",),
            vmem_limit_bytes=_VMEM_LIMIT,
        ),
        cost_estimate=cost,
    )(x2, y2)

    return out2.reshape(x.shape)


if __name__ == "__main__":
    key = jax.random.PRNGKey(0)
    kx0, ky0, kx1, ky1, kx2, ky2 = jax.random.split(key, 6)

    # 1) The module's own example shape (1, 3, 5, 4): tiny + lane-ragged, so
    #    it takes the plain-XLA fallback path (semantics unchanged).
    x_small = jax.random.normal(kx0, (1, 3, 5, 4), dtype=jnp.float32)
    y_small = jax.random.normal(ky0, (1, 3, 5, 4), dtype=jnp.float32)
    out_small = non_redundant_to_copy_net(x_small, y_small)
    jax.block_until_ready(out_small)
    assert out_small.shape == (1, 3, 5, 4)
    assert out_small.dtype == jnp.float32
    assert jnp.allclose(out_small, x_small + y_small.astype(jnp.float32),
                        atol=1e-6), "small-path mismatch vs reference"

    # 2) A small lane-dense NCHW shape exercising the tiled Pallas path by
    #    lowering the fallback threshold: (2, 4, 128, 128) -> 131072 elems
    #    -> (1024, 128) view -> one full-array block (tile_r == rows).
    #    y is bf16 to exercise the in-kernel cast with a narrow HBM read.
    shape = (2, 4, 128, 128)
    x_big = jax.random.normal(kx1, shape, dtype=jnp.float32)
    y_big = jax.random.normal(ky1, shape, dtype=jnp.bfloat16)
    out_big = non_redundant_to_copy_net(x_big, y_big, min_pallas_elems=1)
    jax.block_until_ready(out_big)
    assert out_big.shape == shape
    assert out_big.dtype == jnp.float32
    ref_big = x_big + y_big.astype(jnp.float32)
    assert jnp.allclose(out_big, ref_big, atol=1e-6), "pallas-path mismatch vs reference"

    # 3) A shape whose row count is NOT a multiple of the 4096-row cap
    #    (rows = 1536 + 4096 = 5632) to exercise the divisor-seeking tile
    #    picker and multi-step grid: (1, 4, 176, 1024) -> rows = 5632,
    #    tile_r divides rows exactly (no padded last block).
    shape3 = (1, 4, 176, 1024)
    x_mid = jax.random.normal(kx2, shape3, dtype=jnp.float32)
    y_mid = jax.random.normal(ky2, shape3, dtype=jnp.float32)
    out_mid = non_redundant_to_copy_net(x_mid, y_mid, min_pallas_elems=1)
    jax.block_until_ready(out_mid)
    assert out_mid.shape == shape3
    assert out_mid.dtype == jnp.float32
    ref_mid = x_mid + y_mid.astype(jnp.float32)
    assert jnp.allclose(out_mid, ref_mid, atol=1e-6), "divisor-path mismatch vs reference"

    print("KERNEL_OK")
</pallas_src>

<mosaic_0001>
module attributes {stable_mosaic.version = 11 : i64} {
  func.func @_add_cast_kernel(%arg0: i32, %arg1: memref<1024x128xf32, #tpu.memory_space<vmem>>, %arg2: memref<1024x128xbf16, #tpu.memory_space<vmem>>, %arg3: memref<1024x128xf32, #tpu.memory_space<vmem>>) attributes {dimension_semantics = [#tpu.dimension_semantics<parallel>], iteration_bounds = array<i64: 1>, scalar_prefetch = 0 : i64, scratch_operands = 0 : i64, tpu.core_type = #tpu.core_type<tc>, window_params = [{transform_indices = @transform_0, window_bounds = array<i64: 1024, 128>}, {transform_indices = @transform_1, window_bounds = array<i64: 1024, 128>}, {transform_indices = @transform_2, window_bounds = array<i64: 1024, 128>}]} {
    %c0 = arith.constant 0 : index
    %c0_0 = arith.constant 0 : index
    %0 = vector.load %arg1[%c0, %c0_0] : memref<1024x128xf32, #tpu.memory_space<vmem>>, vector<1024x128xf32>
    %c0_1 = arith.constant 0 : index
    %c0_2 = arith.constant 0 : index
    %1 = vector.load %arg2[%c0_1, %c0_2] : memref<1024x128xbf16, #tpu.memory_space<vmem>>, vector<1024x128xbf16>
    %2 = arith.extf %1 : vector<1024x128xbf16> to vector<1024x128xf32>
    %3 = arith.addf %0, %2 : vector<1024x128xf32>
    %c0_3 = arith.constant 0 : index
    %c0_4 = arith.constant 0 : index
    %4 = vector.load %arg3[%c0_3, %c0_4] : memref<1024x128xf32, #tpu.memory_space<vmem>>, vector<1024x128xf32>
    tpu.vector_store %arg3[%c0_3, %c0_4], %3 {strides = array<i32>} : memref<1024x128xf32, #tpu.memory_space<vmem>>, vector<1024x128xf32>,
    return
  }
  func.func @transform_0(%arg0: i32) -> (i32, i32) {
    %c0_i32 = arith.constant 0 : i32
    %c0_i32_0 = arith.constant 0 : i32
    return %arg0, %c0_i32 : i32, i32
  }
  func.func @transform_1(%arg0: i32) -> (i32, i32) {
    %c0_i32 = arith.constant 0 : i32
    %c0_i32_0 = arith.constant 0 : i32
    return %arg0, %c0_i32 : i32, i32
  }
  func.func @transform_2(%arg0: i32) -> (i32, i32) {
    %c0_i32 = arith.constant 0 : i32
    %c0_i32_0 = arith.constant 0 : i32
    return %arg0, %c0_i32 : i32, i32
  }
}

</mosaic_0001>

<bundles_post_ra>
// kernel: tpu_custom_call.1
= control target key start
LH: loop header
LB: loop body
LE: loop exit
PB: predicated region body
PF: predicated region fallthrough
CT: control target
= control target key end

     0   :  { %7 = vsyncpa [#allocation3], 0  ;;  %s1127_s0 = inlined_call_operand.hbm [shape: f32[1024,128], index: 0, kind: input, shape index: {}]   ;;  %s1128_s1 = inlined_call_operand.hbm [shape: bf16[1024,128], index: 1, kind: input, shape index: {}]   ;;  %s1129_s2 = inlined_call_operand.hbm [shape: f32[1024,128], index: 2, kind: output, shape index: {}]  }
   0x1   :  { %8 = vsyncpa [#allocation6], 0 }
   0x2   :  { %9 = vsyncpa [#allocation4], 0  ;;  %s1090_s9 = smov [#allocation2]  }
   0x3   :  { %s15_s10 = sshll.u32 %s1090_s9, 4  ;;  %s16_s10 = int_to_ptr.vmem [resolvable:$true] %s15_s10 }
   0x4   :  { %s1032_s11 = scalar_lea.vmem %s16_s10, 16384  ;;  %p1037_p1 = scmp.lt.s32.totalorder %s16_s10, %s16_s10 }
   0x5   :  { %p1033_p0 = scmp.ne.s32.totalorder %s16_s10, %s1032_s11  ;;  %p1038_p2 = scmp.lt.s32.totalorder %s1032_s11, %s1032_s11 }
   0x7   :  { %p1039_p3 = por %p1038_p2, %p1037_p1 }
   0x9   :  { %p1040_p4 = pnand %p1039_p3, %p1033_p0 }
   0xb   :  { %1043 = shalt.err (!%p1040_p4)
}
   0xc   :  { %s1091_s12 = smov 128   ;;  %s1092_s13 = smov 8  }
   0xd   :  { %21 = dma.hbm_to_vmem [thread:$0]  %s1127_s0, 16384, %s16_s10, [#allocation3], %s1091_s12, %s1091_s12, %s1092_s13  }
   0xe   :  { %s1093_s16 = smov [#allocation5]  }
   0xf   :  { %s27_s17 = sshll.u32 %s1093_s16, 4  ;;  %s28_s17 = int_to_ptr.vmem [resolvable:$true] %s27_s17 }
  0x10   :  { %s1052_s18 = scalar_lea.vmem %s28_s17, 8192  ;;  %p1057_p6 = scmp.lt.s32.totalorder %s28_s17, %s28_s17 }
  0x11   :  { %p1053_p5 = scmp.ne.s32.totalorder %s28_s17, %s1052_s18  ;;  %p1058_p7 = scmp.lt.s32.totalorder %s1052_s18, %s1052_s18 }
  0x13   :  { %p1059_p8 = por %p1058_p7, %p1057_p6 }
  0x15   :  { %p1060_p9 = pnand %p1059_p8, %p1053_p5 }
  0x17   :  { %1063 = shalt.err (!%p1060_p9)
}
  0x18   :  { %s1094_s19 = smov 64   ;;  %s1095_s20 = smov 4  }
  0x19   :  { %33 = dma.hbm_to_vmem [thread:$0]  %s1128_s1, 8192, %s28_s17, [#allocation6], %s1094_s19, %s1094_s19, %s1095_s20  }
  0x1a   :  { %1084 = dma.done.wait [#allocation3], 16384  }
  0x1b   :  { %1085 = vsyncadd [#allocation3], 4294950912 }
  0x1c   :  { %1086 = dma.done.wait [#allocation6], 8192  }
  0x1d   :  { %1087 = vsyncadd [#allocation6], 4294959104  ;;  %v40_v0 = vld [vmem:[#allocation2] sm:$0xff]  ;;  %v41_v2 = vld [vmem:[#allocation2 + $0x8] sm:$0xff]  ;;  %s1096_s0 = smov [#allocation7]  }
  0x1e   :  { %v699_v1 = vld [vmem:[#allocation5] sm:$0xff]   ;;  %v42_v5 = vld [vmem:[#allocation2 + $0x10] sm:$0xff]  ;;  %v954_v6 = vld [vmem:[#allocation5 + $0x8] sm:$0xff]   ;;  %s685_s1 = sshll.u32 %s1096_s0, 4  ;;  %s686_s1 = int_to_ptr.vmem [resolvable:$true] %s685_s1 }
  0x1f   :  { %v700_v3 = vunpack.c.l.bf16 %v699_v1  ;;  %v701_v4 = vunpack.c.h.bf16 %v699_v1  ;;  %v43_v7 = vld [vmem:[#allocation2 + $0x18] sm:$0xff]  ;;  %v704_v8 = vunpack.c.l.bf16 %v954_v6  ;;  %v705_v9 = vunpack.c.h.bf16 %v954_v6  ;;  %v44_v10 = vld [vmem:[#allocation2 + $0x20] sm:$0xff]  ;;  %v955_v11 = vld [vmem:[#allocation5 + $0x10] sm:$0xff]   ;;  %s1064_s23 = scalar_lea.vmem %s686_s1, 16384  ;;  %p1069_p11 = scmp.lt.s32.totalorder %s686_s1, %s686_s1 }
  0x20   :  { %v45_v12 = vld [vmem:[#allocation2 + $0x28] sm:$0xff]  ;;  %v708_v15 = vunpack.c.l.bf16 %v955_v11  ;;  %v709_v16 = vunpack.c.h.bf16 %v955_v11  ;;  %v46_v17 = vld [vmem:[#allocation2 + $0x30] sm:$0xff]  ;;  %v956_v18 = vld [vmem:[#allocation5 + $0x18] sm:$0xff]   ;;  %p1065_p10 = scmp.ne.s32.totalorder %s686_s1, %s1064_s23  ;;  %p1070_p12 = scmp.lt.s32.totalorder %s1064_s23, %s1064_s23 }
  0x21   :  { %v424_v13 = vadd.f32 %v700_v3, %v40_v0  ;;  %v425_v14 = vadd.f32 %v701_v4, %v41_v2  ;;  %v47_v19 = vld [vmem:[#allocation2 + $0x38] sm:$0xff]  ;;  %v426_v20 = vadd.f32 %v704_v8, %v42_v5  ;;  %v427_v21 = vadd.f32 %v705_v9, %v43_v7  ;;  %v48_v24 = vld [vmem:[#allocation2 + $0x40] sm:$0xff]  ;;  %v49_v26 = vld [vmem:[#allocation2 + $0x48] sm:$0xff] }
  0x22   :  { %v712_v22 = vunpack.c.l.bf16 %v956_v18  ;;  %v713_v23 = vunpack.c.h.bf16 %v956_v18  ;;  %v957_v25 = vld [vmem:[#allocation5 + $0x20] sm:$0xff]   ;;  %v428_v27 = vadd.f32 %v708_v15, %v44_v10  ;;  %v429_v28 = vadd.f32 %v709_v16, %v45_v12  ;;  %v50_v31 = vld [vmem:[#allocation2 + $0x50] sm:$0xff]  ;;  %v958_v32 = vld [vmem:[#allocation5 + $0x28] sm:$0xff]   ;;  %p1071_p13 = por %p1070_p12, %p1069_p11 }
  0x23   :  { %552 = vst [vmem:[#allocation7] sm:$0xff] %v424_v13  ;;  %553 = vst [vmem:[#allocation7 + $0x8] sm:$0xff] %v425_v14  ;;  %v716_v29 = vunpack.c.l.bf16 %v957_v25  ;;  %v717_v30 = vunpack.c.h.bf16 %v957_v25  ;;  %v51_v33 = vld [vmem:[#allocation2 + $0x58] sm:$0xff]  ;;  %v720_v36 = vunpack.c.l.bf16 %v958_v32  ;;  %v721_v37 = vunpack.c.h.bf16 %v958_v32  ;;  %v52_v38 = vld [vmem:[#allocation2 + $0x60] sm:$0xff] }
  0x24   :  { %554 = vst [vmem:[#allocation7 + $0x10] sm:$0xff] %v426_v20  ;;  %555 = vst [vmem:[#allocation7 + $0x18] sm:$0xff] %v427_v21  ;;  %v430_v34 = vadd.f32 %v712_v22, %v46_v17  ;;  %v431_v35 = vadd.f32 %v713_v23, %v47_v19  ;;  %v959_v39 = vld [vmem:[#allocation5 + $0x30] sm:$0xff]   ;;  %v53_v40 = vld [vmem:[#allocation2 + $0x68] sm:$0xff]  ;;  %p1072_p0 = pnand %p1071_p13, %p1065_p10 }
  0x25   :  { %556 = vst [vmem:[#allocation7 + $0x20] sm:$0xff] %v428_v27  ;;  %557 = vst [vmem:[#allocation7 + $0x28] sm:$0xff] %v429_v28  ;;  %v432_v41 = vadd.f32 %v716_v29, %v48_v24  ;;  %v433_v42 = vadd.f32 %v717_v30, %v49_v26  ;;  %v724_v43 = vunpack.c.l.bf16 %v959_v39  ;;  %v725_v44 = vunpack.c.h.bf16 %v959_v39  ;;  %v54_v45 = vld [vmem:[#allocation2 + $0x70] sm:$0xff]  ;;  %v960_v46 = vld [vmem:[#allocation5 + $0x38] sm:$0xff]  }
  0x26   :  { %v55_v47 = vld [vmem:[#allocation2 + $0x78] sm:$0xff]  ;;  %558 = vst [vmem:[#allocation7 + $0x30] sm:$0xff] %v430_v34  ;;  %559 = vst [vmem:[#allocation7 + $0x38] sm:$0xff] %v431_v35  ;;  %v434_v48 = vadd.f32 %v720_v36, %v50_v31  ;;  %v435_v49 = vadd.f32 %v721_v37, %v51_v33  ;;  %v728_v50 = vunpack.c.l.bf16 %v960_v46  ;;  %v729_v51 = vunpack.c.h.bf16 %v960_v46  ;;  %v56_v52 = vld [vmem:[#allocation2 + $0x80] sm:$0xff] }
  0x27   :  { %v961_v53 = vld [vmem:[#allocation5 + $0x40] sm:$0xff]   ;;  %v57_v54 = vld [vmem:[#allocation2 + $0x88] sm:$0xff]  ;;  %560 = vst [vmem:[#allocation7 + $0x40] sm:$0xff] %v432_v41  ;;  %561 = vst [vmem:[#allocation7 + $0x48] sm:$0xff] %v433_v42  ;;  %v436_v55 = vadd.f32 %v724_v43, %v52_v38  ;;  %v437_v56 = vadd.f32 %v725_v44, %v53_v40 }
  0x28   :  { %v732_v57 = vunpack.c.l.bf16 %v961_v53  ;;  %v733_v58 = vunpack.c.h.bf16 %v961_v53  ;;  %v58_v59 = vld [vmem:[#allocation2 + $0x90] sm:$0xff]  ;;  %v962_v60 = vld [vmem:[#allocation5 + $0x48] sm:$0xff]   ;;  %v59_v61 = vld [vmem:[#allocation2 + $0x98] sm:$0xff]  ;;  %562 = vst [vmem:[#allocation7 + $0x50] sm:$0xff] %v434_v48  ;;  %v438_v62 = vadd.f32 %v728_v50, %v54_v45  ;;  %v439_v63 = vadd.f32 %v729_v51, %v55_v47 }
  0x29   :  { %563 = vst [vmem:[#allocation7 + $0x58] sm:$0xff] %v435_v49  ;;  %v736_v0 = vunpack.c.l.bf16 %v962_v60  ;;  %v737_v1 = vunpack.c.h.bf16 %v962_v60  ;;  %v60_v2 = vld [vmem:[#allocation2 + $0xa0] sm:$0xff]  ;;  %v963_v3 = vld [vmem:[#allocation5 + $0x50] sm:$0xff]   ;;  %v61_v4 = vld [vmem:[#allocation2 + $0xa8] sm:$0xff] }
  0x2a   :  { %564 = vst [vmem:[#allocation7 + $0x60] sm:$0xff] %v436_v55  ;;  %565 = vst [vmem:[#allocation7 + $0x68] sm:$0xff] %v437_v56  ;;  %v440_v5 = vadd.f32 %v732_v57, %v56_v52  ;;  %v441_v6 = vadd.f32 %v733_v58, %v57_v54  ;;  %v740_v7 = vunpack.c.l.bf16 %v963_v3  ;;  %v741_v8 = vunpack.c.h.bf16 %v963_v3  ;;  %v62_v9 = vld [vmem:[#allocation2 + $0xb0] sm:$0xff]  ;;  %v964_v10 = vld [vmem:[#allocation5 + $0x58] sm:$0xff]  }
  0x2b   :  { %v63_v11 = vld [vmem:[#allocation2 + $0xb8] sm:$0xff]  ;;  %566 = vst [vmem:[#allocation7 + $0x70] sm:$0xff] %v438_v62  ;;  %567 = vst [vmem:[#allocation7 + $0x78] sm:$0xff] %v439_v63  ;;  %v442_v12 = vadd.f32 %v736_v0, %v58_v59  ;;  %v443_v13 = vadd.f32 %v737_v1, %v59_v61  ;;  %v744_v14 = vunpack.c.l.bf16 %v964_v10  ;;  %v745_v15 = vunpack.c.h.bf16 %v964_v10  ;;  %v64_v16 = vld [vmem:[#allocation2 + $0xc0] sm:$0xff] }
  0x2c   :  { %v965_v17 = vld [vmem:[#allocation5 + $0x60] sm:$0xff]   ;;  %v65_v18 = vld [vmem:[#allocation2 + $0xc8] sm:$0xff]  ;;  %568 = vst [vmem:[#allocation7 + $0x80] sm:$0xff] %v440_v5  ;;  %569 = vst [vmem:[#allocation7 + $0x88] sm:$0xff] %v441_v6  ;;  %v444_v19 = vadd.f32 %v740_v7, %v60_v2  ;;  %v445_v20 = vadd.f32 %v741_v8, %v61_v4 }
  0x2d   :  { %v748_v21 = vunpack.c.l.bf16 %v965_v17  ;;  %v749_v22 = vunpack.c.h.bf16 %v965_v17  ;;  %v66_v23 = vld [vmem:[#allocation2 + $0xd0] sm:$0xff]  ;;  %v966_v24 = vld [vmem:[#allocation5 + $0x68] sm:$0xff]   ;;  %v67_v25 = vld [vmem:[#allocation2 + $0xd8] sm:$0xff]  ;;  %570 = vst [vmem:[#allocation7 + $0x90] sm:$0xff] %v442_v12  ;;  %v446_v26 = vadd.f32 %v744_v14, %v62_v9  ;;  %v447_v27 = vadd.f32 %v745_v15, %v63_v11 }
  0x2e   :  { %571 = vst [vmem:[#allocation7 + $0x98] sm:$0xff] %v443_v13  ;;  %v752_v28 = vunpack.c.l.bf16 %v966_v24  ;;  %v753_v29 = vunpack.c.h.bf16 %v966_v24  ;;  %v68_v30 = vld [vmem:[#allocation2 + $0xe0] sm:$0xff]  ;;  %v967_v31 = vld [vmem:[#allocation5 + $0x70] sm:$0xff]   ;;  %v69_v32 = vld [vmem:[#allocation2 + $0xe8] sm:$0xff] }
  0x2f   :  { %572 = vst [vmem:[#allocation7 + $0xa0] sm:$0xff] %v444_v19  ;;  %573 = vst [vmem:[#allocation7 + $0xa8] sm:$0xff] %v445_v20  ;;  %v448_v33 = vadd.f32 %v748_v21, %v64_v16  ;;  %v449_v34 = vadd.f32 %v749_v22, %v65_v18  ;;  %v756_v35 = vunpack.c.l.bf16 %v967_v31  ;;  %v757_v36 = vunpack.c.h.bf16 %v967_v31  ;;  %v70_v37 = vld [vmem:[#allocation2 + $0xf0] sm:$0xff]  ;;  %v968_v38 = vld [vmem:[#allocation5 + $0x78] sm:$0xff]  }
  0x30   :  { %v71_v39 = vld [vmem:[#allocation2 + $0xf8] sm:$0xff]  ;;  %574 = vst [vmem:[#allocation7 + $0xb0] sm:$0xff] %v446_v26  ;;  %575 = vst [vmem:[#allocation7 + $0xb8] sm:$0xff] %v447_v27  ;;  %v450_v40 = vadd.f32 %v752_v28, %v66_v23  ;;  %v451_v41 = vadd.f32 %v753_v29, %v67_v25  ;;  %v760_v42 = vunpack.c.l.bf16 %v968_v38  ;;  %v761_v43 = vunpack.c.h.bf16 %v968_v38  ;;  %v72_v44 = vld [vmem:[#allocation2 + $0x100] sm:$0xff] }
  0x31   :  { %v969_v45 = vld [vmem:[#allocation5 + $0x80] sm:$0xff]   ;;  %v73_v46 = vld [vmem:[#allocation2 + $0x108] sm:$0xff]  ;;  %576 = vst [vmem:[#allocation7 + $0xc0] sm:$0xff] %v448_v33  ;;  %577 = vst [vmem:[#allocation7 + $0xc8] sm:$0xff] %v449_v34  ;;  %v452_v47 = vadd.f32 %v756_v35, %v68_v30  ;;  %v453_v48 = vadd.f32 %v757_v36, %v69_v32 }
  0x32   :  { %v764_v49 = vunpack.c.l.bf16 %v969_v45  ;;  %v765_v50 = vunpack.c.h.bf16 %v969_v45  ;;  %v74_v51 = vld [vmem:[#allocation2 + $0x110] sm:$0xff]  ;;  %v970_v52 = vld [vmem:[#allocation5 + $0x88] sm:$0xff]   ;;  %v75_v53 = vld [vmem:[#allocation2 + $0x118] sm:$0xff]  ;;  %578 = vst [vmem:[#allocation7 + $0xd0] sm:$0xff] %v450_v40  ;;  %v454_v54 = vadd.f32 %v760_v42, %v70_v37  ;;  %v455_v55 = vadd.f32 %v761_v43, %v71_v39 }
  0x33   :  { %579 = vst [vmem:[#allocation7 + $0xd8] sm:$0xff] %v451_v41  ;;  %v768_v56 = vunpack.c.l.bf16 %v970_v52  ;;  %v769_v57 = vunpack.c.h.bf16 %v970_v52  ;;  %v76_v58 = vld [vmem:[#allocation2 + $0x120] sm:$0xff]  ;;  %v971_v59 = vld [vmem:[#allocation5 + $0x90] sm:$0xff]   ;;  %v77_v60 = vld [vmem:[#allocation2 + $0x128] sm:$0xff] }
  0x34   :  { %580 = vst [vmem:[#allocation7 + $0xe0] sm:$0xff] %v452_v47  ;;  %581 = vst [vmem:[#allocation7 + $0xe8] sm:$0xff] %v453_v48  ;;  %v456_v61 = vadd.f32 %v764_v49, %v72_v44  ;;  %v457_v62 = vadd.f32 %v765_v50, %v73_v46  ;;  %v772_v63 = vunpack.c.l.bf16 %v971_v59  ;;  %v773_v0 = vunpack.c.h.bf16 %v971_v59  ;;  %v78_v1 = vld [vmem:[#allocation2 + $0x130] sm:$0xff]  ;;  %v972_v2 = vld [vmem:[#allocation5 + $0x98] sm:$0xff]  }
  0x35   :  { %v79_v3 = vld [vmem:[#allocation2 + $0x138] sm:$0xff]  ;;  %582 = vst [vmem:[#allocation7 + $0xf0] sm:$0xff] %v454_v54  ;;  %583 = vst [vmem:[#allocation7 + $0xf8] sm:$0xff] %v455_v55  ;;  %v458_v4 = vadd.f32 %v768_v56, %v74_v51  ;;  %v459_v5 = vadd.f32 %v769_v57, %v75_v53  ;;  %v776_v6 = vunpack.c.l.bf16 %v972_v2  ;;  %v777_v7 = vunpack.c.h.bf16 %v972_v2  ;;  %v80_v8 = vld [vmem:[#allocation2 + $0x140] sm:$0xff] }
  0x36   :  { %v973_v9 = vld [vmem:[#allocation5 + $0xa0] sm:$0xff]   ;;  %v81_v10 = vld [vmem:[#allocation2 + $0x148] sm:$0xff]  ;;  %584 = vst [vmem:[#allocation7 + $0x100] sm:$0xff] %v456_v61  ;;  %585 = vst [vmem:[#allocation7 + $0x108] sm:$0xff] %v457_v62  ;;  %v460_v11 = vadd.f32 %v772_v63, %v76_v58  ;;  %v461_v12 = vadd.f32 %v773_v0, %v77_v60 }
  0x37   :  { %v780_v13 = vunpack.c.l.bf16 %v973_v9  ;;  %v781_v14 = vunpack.c.h.bf16 %v973_v9  ;;  %v82_v15 = vld [vmem:[#allocation2 + $0x150] sm:$0xff]  ;;  %v974_v16 = vld [vmem:[#allocation5 + $0xa8] sm:$0xff]   ;;  %v83_v17 = vld [vmem:[#allocation2 + $0x158] sm:$0xff]  ;;  %586 = vst [vmem:[#allocation7 + $0x110] sm:$0xff] %v458_v4  ;;  %v462_v18 = vadd.f32 %v776_v6, %v78_v1  ;;  %v463_v19 = vadd.f32 %v777_v7, %v79_v3 }
  0x38   :  { %587 = vst [vmem:[#allocation7 + $0x118] sm:$0xff] %v459_v5  ;;  %v784_v20 = vunpack.c.l.bf16 %v974_v16  ;;  %v785_v21 = vunpack.c.h.bf16 %v974_v16  ;;  %v84_v22 = vld [vmem:[#allocation2 + $0x160] sm:$0xff]  ;;  %v975_v23 = vld [vmem:[#allocation5 + $0xb0] sm:$0xff]   ;;  %v85_v24 = vld [vmem:[#allocation2 + $0x168] sm:$0xff] }
  0x39   :  { %588 = vst [vmem:[#allocation7 + $0x120] sm:$0xff] %v460_v11  ;;  %589 = vst [vmem:[#allocation7 + $0x128] sm:$0xff] %v461_v12  ;;  %v464_v25 = vadd.f32 %v780_v13, %v80_v8  ;;  %v465_v26 = vadd.f32 %v781_v14, %v81_v10  ;;  %v788_v27 = vunpack.c.l.bf16 %v975_v23  ;;  %v789_v28 = vunpack.c.h.bf16 %v975_v23  ;;  %v86_v29 = vld [vmem:[#allocation2 + $0x170] sm:$0xff]  ;;  %v976_v30 = vld [vmem:[#allocation5 + $0xb8] sm:$0xff]  }
  0x3a   :  { %v87_v31 = vld [vmem:[#allocation2 + $0x178] sm:$0xff]  ;;  %590 = vst [vmem:[#allocation7 + $0x130] sm:$0xff] %v462_v18  ;;  %591 = vst [vmem:[#allocation7 + $0x138] sm:$0xff] %v463_v19  ;;  %v466_v32 = vadd.f32 %v784_v20, %v82_v15  ;;  %v467_v33 = vadd.f32 %v785_v21, %v83_v17  ;;  %v792_v34 = vunpack.c.l.bf16 %v976_v30  ;;  %v793_v35 = vunpack.c.h.bf16 %v976_v30  ;;  %v88_v36 = vld [vmem:[#allocation2 + $0x180] sm:$0xff] }
  0x3b   :  { %v977_v37 = vld [vmem:[#allocation5 + $0xc0] sm:$0xff]   ;;  %v89_v38 = vld [vmem:[#allocation2 + $0x188] sm:$0xff]  ;;  %592 = vst [vmem:[#allocation7 + $0x140] sm:$0xff] %v464_v25  ;;  %593 = vst [vmem:[#allocation7 + $0x148] sm:$0xff] %v465_v26  ;;  %v468_v39 = vadd.f32 %v788_v27, %v84_v22  ;;  %v469_v40 = vadd.f32 %v789_v28, %v85_v24 }
  0x3c   :  { %v796_v41 = vunpack.c.l.bf16 %v977_v37  ;;  %v797_v42 = vunpack.c.h.bf16 %v977_v37  ;;  %v90_v43 = vld [vmem:[#allocation2 + $0x190] sm:$0xff]  ;;  %v978_v44 = vld [vmem:[#allocation5 + $0xc8] sm:$0xff]   ;;  %v91_v45 = vld [vmem:[#allocation2 + $0x198] sm:$0xff]  ;;  %594 = vst [vmem:[#allocation7 + $0x150] sm:$0xff] %v466_v32  ;;  %v470_v46 = vadd.f32 %v792_v34, %v86_v29  ;;  %v471_v47 = vadd.f32 %v793_v35, %v87_v31 }
  0x3d   :  { %595 = vst [vmem:[#allocation7 + $0x158] sm:$0xff] %v467_v33  ;;  %v800_v48 = vunpack.c.l.bf16 %v978_v44  ;;  %v801_v49 = vunpack.c.h.bf16 %v978_v44  ;;  %v92_v50 = vld [vmem:[#allocation2 + $0x1a0] sm:$0xff]  ;;  %v979_v51 = vld [vmem:[#allocation5 + $0xd0] sm:$0xff]   ;;  %v93_v52 = vld [vmem:[#allocation2 + $0x1a8] sm:$0xff] }
  0x3e   :  { %596 = vst [vmem:[#allocation7 + $0x160] sm:$0xff] %v468_v39  ;;  %597 = vst [vmem:[#allocation7 + $0x168] sm:$0xff] %v469_v40  ;;  %v472_v53 = vadd.f32 %v796_v41, %v88_v36  ;;  %v473_v54 = vadd.f32 %v797_v42, %v89_v38  ;;  %v804_v55 = vunpack.c.l.bf16 %v979_v51  ;;  %v805_v56 = vunpack.c.h.bf16 %v979_v51  ;;  %v94_v57 = vld [vmem:[#allocation2 + $0x1b0] sm:$0xff]  ;;  %v980_v58 = vld [vmem:[#allocation5 + $0xd8] sm:$0xff]  }
  0x3f   :  { %v95_v59 = vld [vmem:[#allocation2 + $0x1b8] sm:$0xff]  ;;  %598 = vst [vmem:[#allocation7 + $0x170] sm:$0xff] %v470_v46  ;;  %599 = vst [vmem:[#allocation7 + $0x178] sm:$0xff] %v471_v47  ;;  %v474_v60 = vadd.f32 %v800_v48, %v90_v43  ;;  %v475_v61 = vadd.f32 %v801_v49, %v91_v45  ;;  %v808_v62 = vunpack.c.l.bf16 %v980_v58  ;;  %v809_v63 = vunpack.c.h.bf16 %v980_v58  ;;  %v96_v0 = vld [vmem:[#allocation2 + $0x1c0] sm:$0xff] }
  0x40   :  { %v981_v1 = vld [vmem:[#allocation5 + $0xe0] sm:$0xff]   ;;  %v97_v2 = vld [vmem:[#allocation2 + $0x1c8] sm:$0xff]  ;;  %600 = vst [vmem:[#allocation7 + $0x180] sm:$0xff] %v472_v53  ;;  %601 = vst [vmem:[#allocation7 + $0x188] sm:$0xff] %v473_v54  ;;  %v476_v3 = vadd.f32 %v804_v55, %v92_v50  ;;  %v477_v4 = vadd.f32 %v805_v56, %v93_v52 }
  0x41   :  { %v812_v5 = vunpack.c.l.bf16 %v981_v1  ;;  %v813_v6 = vunpack.c.h.bf16 %v981_v1  ;;  %v98_v7 = vld [vmem:[#allocation2 + $0x1d0] sm:$0xff]  ;;  %v982_v8 = vld [vmem:[#allocation5 + $0xe8] sm:$0xff]   ;;  %v99_v9 = vld [vmem:[#allocation2 + $0x1d8] sm:$0xff]  ;;  %602 = vst [vmem:[#allocation7 + $0x190] sm:$0xff] %v474_v60  ;;  %v478_v10 = vadd.f32 %v808_v62, %v94_v57  ;;  %v479_v11 = vadd.f32 %v809_v63, %v95_v59 }
  0x42   :  { %603 = vst [vmem:[#allocation7 + $0x198] sm:$0xff] %v475_v61  ;;  %v816_v12 = vunpack.c.l.bf16 %v982_v8  ;;  %v817_v13 = vunpack.c.h.bf16 %v982_v8  ;;  %v100_v14 = vld [vmem:[#allocation2 + $0x1e0] sm:$0xff]  ;;  %v983_v15 = vld [vmem:[#allocation5 + $0xf0] sm:$0xff]   ;;  %v101_v16 = vld [vmem:[#allocation2 + $0x1e8] sm:$0xff] }
  0x43   :  { %604 = vst [vmem:[#allocation7 + $0x1a0] sm:$0xff] %v476_v3  ;;  %605 = vst [vmem:[#allocation7 + $0x1a8] sm:$0xff] %v477_v4  ;;  %v480_v17 = vadd.f32 %v812_v5, %v96_v0  ;;  %v481_v18 = vadd.f32 %v813_v6, %v97_v2  ;;  %v820_v19 = vunpack.c.l.bf16 %v983_v15  ;;  %v821_v20 = vunpack.c.h.bf16 %v983_v15  ;;  %v102_v21 = vld [vmem:[#allocation2 + $0x1f0] sm:$0xff]  ;;  %v984_v22 = vld [vmem:[#allocation5 + $0xf8] sm:$0xff]  }
  0x44   :  { %v103_v23 = vld [vmem:[#allocation2 + $0x1f8] sm:$0xff]  ;;  %606 = vst [vmem:[#allocation7 + $0x1b0] sm:$0xff] %v478_v10  ;;  %607 = vst [vmem:[#allocation7 + $0x1b8] sm:$0xff] %v479_v11  ;;  %v482_v24 = vadd.f32 %v816_v12, %v98_v7  ;;  %v483_v25 = vadd.f32 %v817_v13, %v99_v9  ;;  %v824_v26 = vunpack.c.l.bf16 %v984_v22  ;;  %v825_v27 = vunpack.c.h.bf16 %v984_v22  ;;  %v104_v28 = vld [vmem:[#allocation2 + $0x200] sm:$0xff] }
  0x45   :  { %v985_v29 = vld [vmem:[#allocation5 + $0x100] sm:$0xff]   ;;  %v105_v30 = vld [vmem:[#allocation2 + $0x208] sm:$0xff]  ;;  %608 = vst [vmem:[#allocation7 + $0x1c0] sm:$0xff] %v480_v17  ;;  %609 = vst [vmem:[#allocation7 + $0x1c8] sm:$0xff] %v481_v18  ;;  %v484_v31 = vadd.f32 %v820_v19, %v100_v14  ;;  %v485_v32 = vadd.f32 %v821_v20, %v101_v16 }
  0x46   :  { %v828_v33 = vunpack.c.l.bf16 %v985_v29  ;;  %v829_v34 = vunpack.c.h.bf16 %v985_v29  ;;  %v106_v35 = vld [vmem:[#allocation2 + $0x210] sm:$0xff]  ;;  %v986_v36 = vld [vmem:[#allocation5 + $0x108] sm:$0xff]   ;;  %v107_v37 = vld [vmem:[#allocation2 + $0x218] sm:$0xff]  ;;  %610 = vst [vmem:[#allocation7 + $0x1d0] sm:$0xff] %v482_v24  ;;  %v486_v38 = vadd.f32 %v824_v26, %v102_v21  ;;  %v487_v39 = vadd.f32 %v825_v27, %v103_v23 }
  0x47   :  { %611 = vst [vmem:[#allocation7 + $0x1d8] sm:$0xff] %v483_v25  ;;  %v832_v40 = vunpack.c.l.bf16 %v986_v36  ;;  %v833_v41 = vunpack.c.h.bf16 %v986_v36  ;;  %v108_v42 = vld [vmem:[#allocation2 + $0x220] sm:$0xff]  ;;  %v987_v43 = vld [vmem:[#allocation5 + $0x110] sm:$0xff]   ;;  %v109_v44 = vld [vmem:[#allocation2 + $0x228] sm:$0xff] }
  0x48   :  { %612 = vst [vmem:[#allocation7 + $0x1e0] sm:$0xff] %v484_v31  ;;  %613 = vst [vmem:[#allocation7 + $0x1e8] sm:$0xff] %v485_v32  ;;  %v488_v45 = vadd.f32 %v828_v33, %v104_v28  ;;  %v489_v46 = vadd.f32 %v829_v34, %v105_v30  ;;  %v836_v47 = vunpack.c.l.bf16 %v987_v43  ;;  %v837_v48 = vunpack.c.h.bf16 %v987_v43  ;;  %v110_v49 = vld [vmem:[#allocation2 + $0x230] sm:$0xff]  ;;  %v988_v50 = vld [vmem:[#allocation5 + $0x118] sm:$0xff]  }
  0x49   :  { %v111_v51 = vld [vmem:[#allocation2 + $0x238] sm:$0xff]  ;;  %614 = vst [vmem:[#allocation7 + $0x1f0] sm:$0xff] %v486_v38  ;;  %615 = vst [vmem:[#allocation7 + $0x1f8] sm:$0xff] %v487_v39  ;;  %v490_v52 = vadd.f32 %v832_v40, %v106_v35  ;;  %v491_v53 = vadd.f32 %v833_v41, %v107_v37  ;;  %v840_v54 = vunpack.c.l.bf16 %v988_v50  ;;  %v841_v55 = vunpack.c.h.bf16 %v988_v50  ;;  %v112_v56 = vld [vmem:[#allocation2 + $0x240] sm:$0xff] }
  0x4a   :  { %v989_v57 = vld [vmem:[#allocation5 + $0x120] sm:$0xff]   ;;  %v113_v58 = vld [vmem:[#allocation2 + $0x248] sm:$0xff]  ;;  %616 = vst [vmem:[#allocation7 + $0x200] sm:$0xff] %v488_v45  ;;  %617 = vst [vmem:[#allocation7 + $0x208] sm:$0xff] %v489_v46  ;;  %v492_v59 = vadd.f32 %v836_v47, %v108_v42  ;;  %v493_v60 = vadd.f32 %v837_v48, %v109_v44 }
  0x4b   :  { %v844_v61 = vunpack.c.l.bf16 %v989_v57  ;;  %v845_v62 = vunpack.c.h.bf16 %v989_v57  ;;  %v114_v63 = vld [vmem:[#allocation2 + $0x250] sm:$0xff]  ;;  %v990_v0 = vld [vmem:[#allocation5 + $0x128] sm:$0xff]   ;;  %v115_v1 = vld [vmem:[#allocation2 + $0x258] sm:$0xff]  ;;  %618 = vst [vmem:[#allocation7 + $0x210] sm:$0xff] %v490_v52  ;;  %v494_v2 = vadd.f32 %v840_v54, %v110_v49  ;;  %v495_v3 = vadd.f32 %v841_v55, %v111_v51 }
  0x4c   :  { %619 = vst [vmem:[#allocation7 + $0x218] sm:$0xff] %v491_v53  ;;  %v848_v4 = vunpack.c.l.bf16 %v990_v0  ;;  %v849_v5 = vunpack.c.h.bf16 %v990_v0  ;;  %v116_v6 = vld [vmem:[#allocation2 + $0x260] sm:$0xff]  ;;  %v991_v7 = vld [vmem:[#allocation5 + $0x130] sm:$0xff]   ;;  %v117_v8 = vld [vmem:[#allocation2 + $0x268] sm:$0xff] }
  0x4d   :  { %620 = vst [vmem:[#allocation7 + $0x220] sm:$0xff] %v492_v59  ;;  %621 = vst [vmem:[#allocation7 + $0x228] sm:$0xff] %v493_v60  ;;  %v496_v9 = vadd.f32 %v844_v61, %v112_v56  ;;  %v497_v10 = vadd.f32 %v845_v62, %v113_v58  ;;  %v852_v11 = vunpack.c.l.bf16 %v991_v7  ;;  %v853_v12 = vunpack.c.h.bf16 %v991_v7  ;;  %v118_v13 = vld [vmem:[#allocation2 + $0x270] sm:$0xff]  ;;  %v992_v14 = vld [vmem:[#allocation5 + $0x138] sm:$0xff]  }
  0x4e   :  { %v119_v15 = vld [vmem:[#allocation2 + $0x278] sm:$0xff]  ;;  %622 = vst [vmem:[#allocation7 + $0x230] sm:$0xff] %v494_v2  ;;  %623 = vst [vmem:[#allocation7 + $0x238] sm:$0xff] %v495_v3  ;;  %v498_v16 = vadd.f32 %v848_v4, %v114_v63  ;;  %v499_v17 = vadd.f32 %v849_v5, %v115_v1  ;;  %v856_v18 = vunpack.c.l.bf16 %v992_v14  ;;  %v857_v19 = vunpack.c.h.bf16 %v992_v14  ;;  %v120_v20 = vld [vmem:[#allocation2 + $0x280] sm:$0xff] }
  0x4f   :  { %v993_v21 = vld [vmem:[#allocation5 + $0x140] sm:$0xff]   ;;  %v121_v22 = vld [vmem:[#allocation2 + $0x288] sm:$0xff]  ;;  %624 = vst [vmem:[#allocation7 + $0x240] sm:$0xff] %v496_v9  ;;  %625 = vst [vmem:[#allocation7 + $0x248] sm:$0xff] %v497_v10  ;;  %v500_v23 = vadd.f32 %v852_v11, %v116_v6  ;;  %v501_v24 = vadd.f32 %v853_v12, %v117_v8 }
  0x50   :  { %v860_v25 = vunpack.c.l.bf16 %v993_v21  ;;  %v861_v26 = vunpack.c.h.bf16 %v993_v21  ;;  %v122_v27 = vld [vmem:[#allocation2 + $0x290] sm:$0xff]  ;;  %v994_v28 = vld [vmem:[#allocation5 + $0x148] sm:$0xff]   ;;  %v123_v29 = vld [vmem:[#allocation2 + $0x298] sm:$0xff]  ;;  %626 = vst [vmem:[#allocation7 + $0x250] sm:$0xff] %v498_v16  ;;  %v502_v30 = vadd.f32 %v856_v18, %v118_v13  ;;  %v503_v31 = vadd.f32 %v857_v19, %v119_v15 }
  0x51   :  { %627 = vst [vmem:[#allocation7 + $0x258] sm:$0xff] %v499_v17  ;;  %v864_v32 = vunpack.c.l.bf16 %v994_v28  ;;  %v865_v33 = vunpack.c.h.bf16 %v994_v28  ;;  %v124_v34 = vld [vmem:[#allocation2 + $0x2a0] sm:$0xff]  ;;  %v995_v35 = vld [vmem:[#allocation5 + $0x150] sm:$0xff]   ;;  %v125_v36 = vld [vmem:[#allocation2 + $0x2a8] sm:$0xff] }
  0x52   :  { %628 = vst [vmem:[#allocation7 + $0x260] sm:$0xff] %v500_v23  ;;  %629 = vst [vmem:[#allocation7 + $0x268] sm:$0xff] %v501_v24  ;;  %v504_v37 = vadd.f32 %v860_v25, %v120_v20  ;;  %v505_v38 = vadd.f32 %v861_v26, %v121_v22  ;;  %v868_v39 = vunpack.c.l.bf16 %v995_v35  ;;  %v869_v40 = vunpack.c.h.bf16 %v995_v35  ;;  %v126_v41 = vld [vmem:[#allocation2 + $0x2b0] sm:$0xff]  ;;  %v996_v42 = vld [vmem:[#allocation5 + $0x158] sm:$0xff]  }
  0x53   :  { %v127_v43 = vld [vmem:[#allocation2 + $0x2b8] sm:$0xff]  ;;  %630 = vst [vmem:[#allocation7 + $0x270] sm:$0xff] %v502_v30  ;;  %631 = vst [vmem:[#allocation7 + $0x278] sm:$0xff] %v503_v31  ;;  %v506_v44 = vadd.f32 %v864_v32, %v122_v27  ;;  %v507_v45 = vadd.f32 %v865_v33, %v123_v29  ;;  %v872_v46 = vunpack.c.l.bf16 %v996_v42  ;;  %v873_v47 = vunpack.c.h.bf16 %v996_v42  ;;  %v128_v48 = vld [vmem:[#allocation2 + $0x2c0] sm:$0xff] }
  0x54   :  { %v997_v49 = vld [vmem:[#allocation5 + $0x160] sm:$0xff]   ;;  %v129_v50 = vld [vmem:[#allocation2 + $0x2c8] sm:$0xff]  ;;  %632 = vst [vmem:[#allocation7 + $0x280] sm:$0xff] %v504_v37  ;;  %633 = vst [vmem:[#allocation7 + $0x288] sm:$0xff] %v505_v38  ;;  %v508_v51 = vadd.f32 %v868_v39, %v124_v34  ;;  %v509_v52 = vadd.f32 %v869_v40, %v125_v36 }
  0x55   :  { %v876_v53 = vunpack.c.l.bf16 %v997_v49  ;;  %v877_v54 = vunpack.c.h.bf16 %v997_v49  ;;  %v130_v55 = vld [vmem:[#allocation2 + $0x2d0] sm:$0xff]  ;;  %v998_v56 = vld [vmem:[#allocation5 + $0x168] sm:$0xff]   ;;  %v131_v57 = vld [vmem:[#allocation2 + $0x2d8] sm:$0xff]  ;;  %634 = vst [vmem:[#allocation7 + $0x290] sm:$0xff] %v506_v44  ;;  %v510_v58 = vadd.f32 %v872_v46, %v126_v41  ;;  %v511_v59 = vadd.f32 %v873_v47, %v127_v43 }
  0x56   :  { %635 = vst [vmem:[#allocation7 + $0x298] sm:$0xff] %v507_v45  ;;  %v880_v60 = vunpack.c.l.bf16 %v998_v56  ;;  %v881_v61 = vunpack.c.h.bf16 %v998_v56  ;;  %v132_v62 = vld [vmem:[#allocation2 + $0x2e0] sm:$0xff]  ;;  %v999_v63 = vld [vmem:[#allocation5 + $0x170] sm:$0xff]   ;;  %v133_v0 = vld [vmem:[#allocation2 + $0x2e8] sm:$0xff] }
  0x57   :  { %636 = vst [vmem:[#allocation7 + $0x2a0] sm:$0xff] %v508_v51  ;;  %637 = vst [vmem:[#allocation7 + $0x2a8] sm:$0xff] %v509_v52  ;;  %v512_v1 = vadd.f32 %v876_v53, %v128_v48  ;;  %v513_v2 = vadd.f32 %v877_v54, %v129_v50  ;;  %v884_v3 = vunpack.c.l.bf16 %v999_v63  ;;  %v885_v4 = vunpack.c.h.bf16 %v999_v63  ;;  %v134_v5 = vld [vmem:[#allocation2 + $0x2f0] sm:$0xff]  ;;  %v1000_v6 = vld [vmem:[#allocation5 + $0x178] sm:$0xff]  }
  0x58   :  { %v135_v7 = vld [vmem:[#allocation2 + $0x2f8] sm:$0xff]  ;;  %638 = vst [vmem:[#allocation7 + $0x2b0] sm:$0xff] %v510_v58  ;;  %639 = vst [vmem:[#allocation7 + $0x2b8] sm:$0xff] %v511_v59  ;;  %v514_v8 = vadd.f32 %v880_v60, %v130_v55  ;;  %v515_v9 = vadd.f32 %v881_v61, %v131_v57  ;;  %v888_v10 = vunpack.c.l.bf16 %v1000_v6  ;;  %v889_v11 = vunpack.c.h.bf16 %v1000_v6  ;;  %v136_v12 = vld [vmem:[#allocation2 + $0x300] sm:$0xff] }
  0x59   :  { %v1001_v13 = vld [vmem:[#allocation5 + $0x180] sm:$0xff]   ;;  %v137_v14 = vld [vmem:[#allocation2 + $0x308] sm:$0xff]  ;;  %640 = vst [vmem:[#allocation7 + $0x2c0] sm:$0xff] %v512_v1  ;;  %641 = vst [vmem:[#allocation7 + $0x2c8] sm:$0xff] %v513_v2  ;;  %v516_v15 = vadd.f32 %v884_v3, %v132_v62  ;;  %v517_v16 = vadd.f32 %v885_v4, %v133_v0 }
  0x5a   :  { %v892_v17 = vunpack.c.l.bf16 %v1001_v13  ;;  %v893_v18 = vunpack.c.h.bf16 %v1001_v13  ;;  %v138_v19 = vld [vmem:[#allocation2 + $0x310] sm:$0xff]  ;;  %v1002_v20 = vld [vmem:[#allocation5 + $0x188] sm:$0xff]   ;;  %v139_v21 = vld [vmem:[#allocation2 + $0x318] sm:$0xff]  ;;  %642 = vst [vmem:[#allocation7 + $0x2d0] sm:$0xff] %v514_v8  ;;  %v518_v22 = vadd.f32 %v888_v10, %v134_v5  ;;  %v519_v23 = vadd.f32 %v889_v11, %v135_v7 }
  0x5b   :  { %643 = vst [vmem:[#allocation7 + $0x2d8] sm:$0xff] %v515_v9  ;;  %v896_v24 = vunpack.c.l.bf16 %v1002_v20  ;;  %v897_v25 = vunpack.c.h.bf16 %v1002_v20  ;;  %v140_v26 = vld [vmem:[#allocation2 + $0x320] sm:$0xff]  ;;  %v1003_v27 = vld [vmem:[#allocation5 + $0x190] sm:$0xff]   ;;  %v141_v28 = vld [vmem:[#allocation2 + $0x328] sm:$0xff] }
  0x5c   :  { %644 = vst [vmem:[#allocation7 + $0x2e0] sm:$0xff] %v516_v15  ;;  %645 = vst [vmem:[#allocation7 + $0x2e8] sm:$0xff] %v517_v16  ;;  %v520_v29 = vadd.f32 %v892_v17, %v136_v12  ;;  %v521_v30 = vadd.f32 %v893_v18, %v137_v14  ;;  %v900_v31 = vunpack.c.l.bf16 %v1003_v27  ;;  %v901_v32 = vunpack.c.h.bf16 %v1003_v27  ;;  %v142_v33 = vld [vmem:[#allocation2 + $0x330] sm:$0xff]  ;;  %v1004_v34 = vld [vmem:[#allocation5 + $0x198] sm:$0xff]  }
  0x5d   :  { %v143_v35 = vld [vmem:[#allocation2 + $0x338] sm:$0xff]  ;;  %646 = vst [vmem:[#allocation7 + $0x2f0] sm:$0xff] %v518_v22  ;;  %647 = vst [vmem:[#allocation7 + $0x2f8] sm:$0xff] %v519_v23  ;;  %v522_v36 = vadd.f32 %v896_v24, %v138_v19  ;;  %v523_v37 = vadd.f32 %v897_v25, %v139_v21  ;;  %v904_v38 = vunpack.c.l.bf16 %v1004_v34  ;;  %v905_v39 = vunpack.c.h.bf16 %v1004_v34  ;;  %v144_v40 = vld [vmem:[#allocation2 + $0x340] sm:$0xff] }
  0x5e   :  { %v1005_v41 = vld [vmem:[#allocation5 + $0x1a0] sm:$0xff]   ;;  %v145_v42 = vld [vmem:[#allocation2 + $0x348] sm:$0xff]  ;;  %648 = vst [vmem:[#allocation7 + $0x300] sm:$0xff] %v520_v29  ;;  %649 = vst [vmem:[#allocation7 + $0x308] sm:$0xff] %v521_v30  ;;  %v524_v43 = vadd.f32 %v900_v31, %v140_v26  ;;  %v525_v44 = vadd.f32 %v901_v32, %v141_v28 }
  0x5f   :  { %v908_v45 = vunpack.c.l.bf16 %v1005_v41  ;;  %v909_v46 = vunpack.c.h.bf16 %v1005_v41  ;;  %v146_v47 = vld [vmem:[#allocation2 + $0x350] sm:$0xff]  ;;  %v1006_v48 = vld [vmem:[#allocation5 + $0x1a8] sm:$0xff]   ;;  %v147_v49 = vld [vmem:[#allocation2 + $0x358] sm:$0xff]  ;;  %650 = vst [vmem:[#allocation7 + $0x310] sm:$0xff] %v522_v36  ;;  %v526_v50 = vadd.f32 %v904_v38, %v142_v33  ;;  %v527_v51 = vadd.f32 %v905_v39, %v143_v35 }
  0x60   :  { %651 = vst [vmem:[#allocation7 + $0x318] sm:$0xff] %v523_v37  ;;  %v912_v52 = vunpack.c.l.bf16 %v1006_v48  ;;  %v913_v53 = vunpack.c.h.bf16 %v1006_v48  ;;  %v148_v54 = vld [vmem:[#allocation2 + $0x360] sm:$0xff]  ;;  %v1007_v55 = vld [vmem:[#allocation5 + $0x1b0] sm:$0xff]   ;;  %v149_v56 = vld [vmem:[#allocation2 + $0x368] sm:$0xff] }
  0x61   :  { %652 = vst [vmem:[#allocation7 + $0x320] sm:$0xff] %v524_v43  ;;  %653 = vst [vmem:[#allocation7 + $0x328] sm:$0xff] %v525_v44  ;;  %v528_v57 = vadd.f32 %v908_v45, %v144_v40  ;;  %v529_v58 = vadd.f32 %v909_v46, %v145_v42  ;;  %v916_v59 = vunpack.c.l.bf16 %v1007_v55  ;;  %v917_v60 = vunpack.c.h.bf16 %v1007_v55  ;;  %v150_v61 = vld [vmem:[#allocation2 + $0x370] sm:$0xff]  ;;  %v1008_v62 = vld [vmem:[#allocation5 + $0x1b8] sm:$0xff]  }
  0x62   :  { %v151_v63 = vld [vmem:[#allocation2 + $0x378] sm:$0xff]  ;;  %654 = vst [vmem:[#allocation7 + $0x330] sm:$0xff] %v526_v50  ;;  %655 = vst [vmem:[#allocation7 + $0x338] sm:$0xff] %v527_v51  ;;  %v530_v0 = vadd.f32 %v912_v52, %v146_v47  ;;  %v531_v1 = vadd.f32 %v913_v53, %v147_v49  ;;  %v920_v2 = vunpack.c.l.bf16 %v1008_v62  ;;  %v921_v3 = vunpack.c.h.bf16 %v1008_v62  ;;  %v152_v4 = vld [vmem:[#allocation2 + $0x380] sm:$0xff] }
  0x63   :  { %v1009_v5 = vld [vmem:[#allocation5 + $0x1c0] sm:$0xff]   ;;  %v153_v6 = vld [vmem:[#allocation2 + $0x388] sm:$0xff]  ;;  %656 = vst [vmem:[#allocation7 + $0x340] sm:$0xff] %v528_v57  ;;  %657 = vst [vmem:[#allocation7 + $0x348] sm:$0xff] %v529_v58  ;;  %v532_v7 = vadd.f32 %v916_v59, %v148_v54  ;;  %v533_v8 = vadd.f32 %v917_v60, %v149_v56 }
  0x64   :  { %v924_v9 = vunpack.c.l.bf16 %v1009_v5  ;;  %v925_v10 = vunpack.c.h.bf16 %v1009_v5  ;;  %v154_v11 = vld [vmem:[#allocation2 + $0x390] sm:$0xff]  ;;  %v1010_v12 = vld [vmem:[#allocation5 + $0x1c8] sm:$0xff]   ;;  %v155_v13 = vld [vmem:[#allocation2 + $0x398] sm:$0xff]  ;;  %658 = vst [vmem:[#allocation7 + $0x350] sm:$0xff] %v530_v0  ;;  %v534_v14 = vadd.f32 %v920_v2, %v150_v61  ;;  %v535_v15 = vadd.f32 %v921_v3, %v151_v63 }
  0x65   :  { %659 = vst [vmem:[#allocation7 + $0x358] sm:$0xff] %v531_v1  ;;  %v928_v16 = vunpack.c.l.bf16 %v1010_v12  ;;  %v929_v17 = vunpack.c.h.bf16 %v1010_v12  ;;  %v156_v18 = vld [vmem:[#allocation2 + $0x3a0] sm:$0xff]  ;;  %v1011_v19 = vld [vmem:[#allocation5 + $0x1d0] sm:$0xff]   ;;  %v157_v20 = vld [vmem:[#allocation2 + $0x3a8] sm:$0xff] }
  0x66   :  { %660 = vst [vmem:[#allocation7 + $0x360] sm:$0xff] %v532_v7  ;;  %661 = vst [vmem:[#allocation7 + $0x368] sm:$0xff] %v533_v8  ;;  %v536_v21 = vadd.f32 %v924_v9, %v152_v4  ;;  %v537_v22 = vadd.f32 %v925_v10, %v153_v6  ;;  %v932_v23 = vunpack.c.l.bf16 %v1011_v19  ;;  %v933_v24 = vunpack.c.h.bf16 %v1011_v19  ;;  %v158_v25 = vld [vmem:[#allocation2 + $0x3b0] sm:$0xff]  ;;  %v1012_v26 = vld [vmem:[#allocation5 + $0x1d8] sm:$0xff]  }
  0x67   :  { %v159_v27 = vld [vmem:[#allocation2 + $0x3b8] sm:$0xff]  ;;  %662 = vst [vmem:[#allocation7 + $0x370] sm:$0xff] %v534_v14  ;;  %663 = vst [vmem:[#allocation7 + $0x378] sm:$0xff] %v535_v15  ;;  %v538_v28 = vadd.f32 %v928_v16, %v154_v11  ;;  %v539_v29 = vadd.f32 %v929_v17, %v155_v13  ;;  %v936_v30 = vunpack.c.l.bf16 %v1012_v26  ;;  %v937_v31 = vunpack.c.h.bf16 %v1012_v26  ;;  %v160_v32 = vld [vmem:[#allocation2 + $0x3c0] sm:$0xff] }
  0x68   :  { %v1013_v33 = vld [vmem:[#allocation5 + $0x1e0] sm:$0xff]   ;;  %v161_v34 = vld [vmem:[#allocation2 + $0x3c8] sm:$0xff]  ;;  %664 = vst [vmem:[#allocation7 + $0x380] sm:$0xff] %v536_v21  ;;  %665 = vst [vmem:[#allocation7 + $0x388] sm:$0xff] %v537_v22  ;;  %v540_v35 = vadd.f32 %v932_v23, %v156_v18  ;;  %v541_v36 = vadd.f32 %v933_v24, %v157_v20 }
  0x69   :  { %v940_v37 = vunpack.c.l.bf16 %v1013_v33  ;;  %v941_v38 = vunpack.c.h.bf16 %v1013_v33  ;;  %v162_v39 = vld [vmem:[#allocation2 + $0x3d0] sm:$0xff]  ;;  %v1014_v40 = vld [vmem:[#allocation5 + $0x1e8] sm:$0xff]   ;;  %v163_v41 = vld [vmem:[#allocation2 + $0x3d8] sm:$0xff]  ;;  %666 = vst [vmem:[#allocation7 + $0x390] sm:$0xff] %v538_v28  ;;  %v542_v42 = vadd.f32 %v936_v30, %v158_v25  ;;  %v543_v43 = vadd.f32 %v937_v31, %v159_v27 }
  0x6a   :  { %667 = vst [vmem:[#allocation7 + $0x398] sm:$0xff] %v539_v29  ;;  %v944_v44 = vunpack.c.l.bf16 %v1014_v40  ;;  %v945_v45 = vunpack.c.h.bf16 %v1014_v40  ;;  %v164_v46 = vld [vmem:[#allocation2 + $0x3e0] sm:$0xff]  ;;  %v1015_v47 = vld [vmem:[#allocation5 + $0x1f0] sm:$0xff]   ;;  %v165_v48 = vld [vmem:[#allocation2 + $0x3e8] sm:$0xff] }
  0x6b   :  { %668 = vst [vmem:[#allocation7 + $0x3a0] sm:$0xff] %v540_v35  ;;  %669 = vst [vmem:[#allocation7 + $0x3a8] sm:$0xff] %v541_v36  ;;  %v544_v49 = vadd.f32 %v940_v37, %v160_v32  ;;  %v545_v50 = vadd.f32 %v941_v38, %v161_v34  ;;  %v948_v51 = vunpack.c.l.bf16 %v1015_v47  ;;  %v949_v52 = vunpack.c.h.bf16 %v1015_v47  ;;  %v166_v53 = vld [vmem:[#allocation2 + $0x3f0] sm:$0xff]  ;;  %v1016_v54 = vld [vmem:[#allocation5 + $0x1f8] sm:$0xff]  }
  0x6c   :  { %v167_v55 = vld [vmem:[#allocation2 + $0x3f8] sm:$0xff]  ;;  %670 = vst [vmem:[#allocation7 + $0x3b0] sm:$0xff] %v542_v42  ;;  %671 = vst [vmem:[#allocation7 + $0x3b8] sm:$0xff] %v543_v43  ;;  %v546_v56 = vadd.f32 %v944_v44, %v162_v39  ;;  %v547_v57 = vadd.f32 %v945_v45, %v163_v41  ;;  %v952_v58 = vunpack.c.l.bf16 %v1016_v54  ;;  %v953_v59 = vunpack.c.h.bf16 %v1016_v54 }
  0x6d   :  { %672 = vst [vmem:[#allocation7 + $0x3c0] sm:$0xff] %v544_v49  ;;  %673 = vst [vmem:[#allocation7 + $0x3c8] sm:$0xff] %v545_v50  ;;  %v548_v60 = vadd.f32 %v948_v51, %v164_v46  ;;  %v549_v61 = vadd.f32 %v949_v52, %v165_v48 }
  0x6e   :  { %674 = vst [vmem:[#allocation7 + $0x3d0] sm:$0xff] %v546_v56  ;;  %675 = vst [vmem:[#allocation7 + $0x3d8] sm:$0xff] %v547_v57  ;;  %v550_v62 = vadd.f32 %v952_v58, %v166_v53  ;;  %v551_v63 = vadd.f32 %v953_v59, %v167_v55 }
  0x6f   :  { %676 = vst [vmem:[#allocation7 + $0x3e0] sm:$0xff] %v548_v60  ;;  %677 = vst [vmem:[#allocation7 + $0x3e8] sm:$0xff] %v549_v61 }
  0x70   :  { %678 = vst [vmem:[#allocation7 + $0x3f0] sm:$0xff] %v550_v62  ;;  %679 = vst [vmem:[#allocation7 + $0x3f8] sm:$0xff] %v551_v63 }
  0x71   :  { %1075 = shalt.err (!%p1072_p0)
}
  0x72   :  { %691 = dma.vmem_to_hbm [thread:$0]  %s686_s1, 16384, %s1129_s2, [#allocation4], %s1091_s12, %s1091_s12, %s1092_s13  }
  0x73   :  { %1088 = dma.done.wait [#allocation4], 16384  }
  0x74   :  { %1089 = vsyncadd [#allocation4], 4294950912 }
  0x75   :  { %695 = vsyncpa [#allocation3], 1 }
  0x76   :  { %696 = vsyncpa [#allocation6], 1 }
  0x77   :  { %697 = vsyncpa [#allocation4], 1 }

</bundles_post_ra>
